<compile_context>
chip_gen: v7x
topology: tpu7x:2x2x1
jax: 0.10.0
libtpu: 0.0.40
codegen_flags: <defaults>
</compile_context>

<pallas_src>
import jax
import jax.numpy as jnp
from jax.experimental import pallas as pl
from jax.experimental.pallas import tpu as pltpu

LEAKY_SLOPE = 0.01  # torch.nn.LeakyReLU default negative_slope


# ---- Pallas kernel (transposed: features on sublanes, batch on lanes) -------
def vanilla_nn_kernel(x_ref, w1_ref, b1_ref, w2_ref, b2_ref, out_ref):
    x = x_ref[...]                                   # (in_feat, tb)

    def leaky_relu(v):
        return jnp.where(v >= 0, v, LEAKY_SLOPE * v)

    # Linear(in, hidden) + LeakyReLU   (W1^T @ x, bias broadcast over lanes)
    h = jnp.dot(w1_ref[...], x, preferred_element_type=jnp.float32) + b1_ref[...]
    h = leaky_relu(h)                                # (hidden, tb)

    # Linear(hidden, card) + LeakyReLU
    o = jnp.dot(w2_ref[...], h, preferred_element_type=jnp.float32) + b2_ref[...]
    o = leaky_relu(o)                                # (card, tb)

    # Sigmoid.  (Module applies LeakyReLU after it too, but sigmoid outputs
    # are strictly positive, so that LeakyReLU is the identity -> dropped.)
    a = jax.nn.sigmoid(o)

    # sumnorm: per-column (= per batch row) normalize.  Sublane reduce (XLU)
    # + EUP reciprocal + one Newton refinement step instead of a VALU divide.
    s = jnp.sum(a, axis=0, keepdims=True)            # (1, tb)
    inv = pl.reciprocal(s, approx=True)
    inv = inv * (2.0 - s * inv)
    out_ref[...] = a * inv


# ---- wrapper ----------------------------------------------------------------
def _pick_tile(batch):
    """Lane tile over the batch axis.

    Whole batch in one block for small B; otherwise a multiple of 256
    (fills the 256-wide v6e/v7x MXU, 2x the 128-wide v5e MXU), capped at 4096
    to stay comfortably inside v7x's 32 MiB scoped-VMEM default, and sized so
    the grid has >= 2 "parallel" steps (both v7x TensorCores do work).
    """
    if batch <= 256:
        return batch
    return min(4096, max(256, (batch // 2 // 256) * 256))


def vanilla_nn_forward(x_m, x_s, params):
    """vanillaNN.forward((x_m, x_s)) -> (row-normalized a_m, None).

    x_s is accepted for interface fidelity but the module never uses it, so it
    is never sent to the kernel (saves a useless DMA).
    """
    del x_s
    w1, b1, w2, b2 = params
    B, in_feat = x_m.shape
    hidden = w1.shape[1]
    card = w2.shape[1]

    tb = _pick_tile(B)
    grid = (pl.cdiv(B, tb),)

    # Transpose in the wrapper so the kernel is fully lane-dense.
    x_t = x_m.T                       # (in_feat, B)
    w1t = w1.T                        # (hidden, in_feat)
    w2t = w2.T                        # (card, hidden)
    b1t = b1.reshape(hidden, 1)
    b2t = b2.reshape(card, 1)

    cost = pl.CostEstimate(
        flops=2 * B * (in_feat * hidden + hidden * card),
        transcendentals=B * (card + 1),                      # sigmoid + recip
        bytes_accessed=4 * (B * (in_feat + card)
                            + in_feat * hidden + hidden * card + hidden + card),
    )

    out_t = pl.pallas_call(
        vanilla_nn_kernel,
        out_shape=jax.ShapeDtypeStruct((card, B), jnp.float32),
        grid_spec=pl.GridSpec(
            grid=grid,
            in_specs=[
                # activations: lane-dense tiles pipelined over the batch axis
                pl.BlockSpec((in_feat, tb), lambda i: (0, i)),
                # weights/biases: same block every step -> VMEM-resident
                pl.BlockSpec((hidden, in_feat), lambda i: (0, 0)),
                pl.BlockSpec((hidden, 1), lambda i: (0, 0)),
                pl.BlockSpec((card, hidden), lambda i: (0, 0)),
                pl.BlockSpec((card, 1), lambda i: (0, 0)),
            ],
            out_specs=pl.BlockSpec((card, tb), lambda i: (0, i)),
        ),
        compiler_params=pltpu.CompilerParams(
            dimension_semantics=("parallel",),   # batch tiles shard across TCs
        ),
        cost_estimate=cost,
    )(x_t, w1t, b1t, w2t, b2t)

    return out_t.T, None


vanilla_nn_forward_jit = jax.jit(vanilla_nn_forward)


# ---- deterministic parameter init (nn.Linear-style uniform) ------------------
def init_linear(key, fan_in, fan_out):
    kw, kb = jax.random.split(key)
    bound = float(fan_in) ** -0.5
    w = jax.random.uniform(kw, (fan_in, fan_out), jnp.float32, -bound, bound)
    b = jax.random.uniform(kb, (fan_out,), jnp.float32, -bound, bound)
    return w, b


# ---- pure-JAX reference (same math, outside the kernel) ----------------------
def reference_forward(x_m, x_s, params):
    w1, b1, w2, b2 = params

    def leaky(v):
        return jnp.where(v >= 0, v, LEAKY_SLOPE * v)

    a = leaky(x_m @ w1 + b1)            # Linear -> LeakyReLU
    a = leaky(a @ w2 + b2)              # Linear -> LeakyReLU
    a = leaky(jax.nn.sigmoid(a))        # Sigmoid -> LeakyReLU (identity)
    s = jnp.sum(a, axis=1, keepdims=True)
    return a / s, None                  # sumnorm (node_type == 'D')


if __name__ == "__main__":
    # small shapes consistent with the module's forward
    batch = 8
    input_features = 16
    hidden = 32
    cardinalities = 4

    key = jax.random.PRNGKey(0)
    kx, ks, k1, k2 = jax.random.split(key, 4)
    x_m = jax.random.normal(kx, (batch, input_features), dtype=jnp.float32)
    # x_s is the variance half of the (a_m, a_s) interface; the module ignores it.
    x_s = jax.random.uniform(ks, (batch, input_features), dtype=jnp.float32) * 0.1

    w1, b1 = init_linear(k1, input_features, hidden)
    w2, b2 = init_linear(k2, hidden, cardinalities)
    params = (w1, b1, w2, b2)

    # 1) tiny-batch path (single grid step, tb == B)
    out_m, out_s = vanilla_nn_forward_jit(x_m, x_s, params)
    out_m = jax.block_until_ready(out_m)

    ref_m, _ = reference_forward(x_m, x_s, params)
    assert out_s is None
    assert out_m.shape == (batch, cardinalities)
    assert jnp.allclose(out_m, ref_m, atol=1e-5, rtol=1e-4)
    assert jnp.allclose(jnp.sum(out_m, axis=1),
                        jnp.ones((batch,), jnp.float32), atol=1e-5)

    # 2) multi-tile path (tb=256, grid=(2,)) to exercise the pipelined layout
    big_b = 512
    kx2 = jax.random.fold_in(kx, 1)
    x_big = jax.random.normal(kx2, (big_b, input_features), dtype=jnp.float32)
    out_big, _ = vanilla_nn_forward_jit(x_big, None, params)
    out_big = jax.block_until_ready(out_big)
    ref_big, _ = reference_forward(x_big, None, params)
    assert out_big.shape == (big_b, cardinalities)
    assert jnp.allclose(out_big, ref_big, atol=1e-5, rtol=1e-4)

    print("KERNEL_OK")
</pallas_src>

<mosaic_0001>
module attributes {stable_mosaic.version = 11 : i64} {
  func.func @vanilla_nn_kernel(%arg0: i32, %arg1: memref<16x8xf32, #tpu.memory_space<vmem>>, %arg2: memref<32x16xf32, #tpu.memory_space<vmem>>, %arg3: memref<32x1xf32, #tpu.memory_space<vmem>>, %arg4: memref<4x32xf32, #tpu.memory_space<vmem>>, %arg5: memref<4x1xf32, #tpu.memory_space<vmem>>, %arg6: memref<4x8xf32, #tpu.memory_space<vmem>>) attributes {dimension_semantics = [#tpu.dimension_semantics<parallel>], iteration_bounds = array<i64: 1>, scalar_prefetch = 0 : i64, scratch_operands = 0 : i64, tpu.core_type = #tpu.core_type<tc>, window_params = [{transform_indices = @transform_0, window_bounds = array<i64: 16, 8>}, {pipeline_mode = #tpu.pipeline_mode<synchronous>, transform_indices = @transform_1, window_bounds = array<i64: 32, 16>}, {pipeline_mode = #tpu.pipeline_mode<synchronous>, transform_indices = @transform_2, window_bounds = array<i64: 32, 1>}, {pipeline_mode = #tpu.pipeline_mode<synchronous>, transform_indices = @transform_3, window_bounds = array<i64: 4, 32>}, {pipeline_mode = #tpu.pipeline_mode<synchronous>, transform_indices = @transform_4, window_bounds = array<i64: 4, 1>}, {transform_indices = @transform_5, window_bounds = array<i64: 4, 8>}]} {
    %c0 = arith.constant 0 : index
    %c0_0 = arith.constant 0 : index
    %0 = vector.load %arg1[%c0, %c0_0] : memref<16x8xf32, #tpu.memory_space<vmem>>, vector<16x8xf32>
    %c0_1 = arith.constant 0 : index
    %c0_2 = arith.constant 0 : index
    %1 = vector.load %arg2[%c0_1, %c0_2] : memref<32x16xf32, #tpu.memory_space<vmem>>, vector<32x16xf32>
    %cst = arith.constant dense<0.000000e+00> : vector<32x8xf32>
    %2 = tpu.matmul %1, %0, %cst {dimension_numbers = #tpu.dot_dimension_numbers<[1], [0], [0], [1], [0, 0, 1, 1], [], []>} : vector<32x16xf32>, vector<16x8xf32>, vector<32x8xf32> -> vector<32x8xf32>
    %c0_3 = arith.constant 0 : index
    %c0_4 = arith.constant 0 : index
    %3 = vector.load %arg3[%c0_3, %c0_4] : memref<32x1xf32, #tpu.memory_space<vmem>>, vector<32x1xf32>
    %4 = vector.broadcast %3 : vector<32x1xf32> to vector<32x8xf32>
    %5 = arith.addf %2, %4 : vector<32x8xf32>
    %cst_5 = arith.constant 0.000000e+00 : f32
    %6 = vector.broadcast %cst_5 : f32 to vector<32x8xf32>
    %7 = arith.cmpf oge, %5, %6 : vector<32x8xf32>
    %cst_6 = arith.constant 0.00999999977 : f32
    %8 = vector.broadcast %cst_6 : f32 to vector<32x8xf32>
    %9 = arith.mulf %8, %5 : vector<32x8xf32>
    %10 = arith.select %7, %5, %9 : vector<32x8xi1>, vector<32x8xf32>
    %c0_7 = arith.constant 0 : index
    %c0_8 = arith.constant 0 : index
    %11 = vector.load %arg4[%c0_7, %c0_8] : memref<4x32xf32, #tpu.memory_space<vmem>>, vector<4x32xf32>
    %cst_9 = arith.constant dense<0.000000e+00> : vector<4x8xf32>
    %12 = tpu.matmul %11, %10, %cst_9 {dimension_numbers = #tpu.dot_dimension_numbers<[1], [0], [0], [1], [0, 0, 1, 1], [], []>} : vector<4x32xf32>, vector<32x8xf32>, vector<4x8xf32> -> vector<4x8xf32>
    %c0_10 = arith.constant 0 : index
    %c0_11 = arith.constant 0 : index
    %13 = vector.load %arg5[%c0_10, %c0_11] : memref<4x1xf32, #tpu.memory_space<vmem>>, vector<4x1xf32>
    %14 = vector.broadcast %13 : vector<4x1xf32> to vector<4x8xf32>
    %15 = arith.addf %12, %14 : vector<4x8xf32>
    %cst_12 = arith.constant 0.000000e+00 : f32
    %16 = vector.broadcast %cst_12 : f32 to vector<4x8xf32>
    %17 = arith.cmpf oge, %15, %16 : vector<4x8xf32>
    %cst_13 = arith.constant 0.00999999977 : f32
    %18 = vector.broadcast %cst_13 : f32 to vector<4x8xf32>
    %19 = arith.mulf %18, %15 : vector<4x8xf32>
    %20 = arith.select %17, %15, %19 : vector<4x8xi1>, vector<4x8xf32>
    %21 = arith.negf %20 : vector<4x8xf32>
    %22 = math.exp %21 : vector<4x8xf32>
    %cst_14 = arith.constant 1.000000e+00 : f32
    %23 = vector.broadcast %cst_14 : f32 to vector<4x8xf32>
    %24 = arith.addf %23, %22 : vector<4x8xf32>
    %25 = arith.divf %23, %24 : vector<4x8xf32>
    %cst_15 = arith.constant dense<0.000000e+00> : vector<8xf32>
    %26 = vector.multi_reduction <add>, %25, %cst_15 [0] : vector<4x8xf32> to vector<8xf32>
    %27 = vector.shape_cast %26 : vector<8xf32> to vector<1x8xf32>
    %28 = tpu.reciprocal %27 {approx = true} : vector<1x8xf32> -> vector<1x8xf32>
    %29 = arith.mulf %27, %28 : vector<1x8xf32>
    %cst_16 = arith.constant 2.000000e+00 : f32
    %30 = vector.broadcast %cst_16 : f32 to vector<1x8xf32>
    %31 = arith.subf %30, %29 : vector<1x8xf32>
    %32 = arith.mulf %28, %31 : vector<1x8xf32>
    %33 = vector.broadcast %32 : vector<1x8xf32> to vector<4x8xf32>
    %34 = arith.mulf %25, %33 : vector<4x8xf32>
    %c0_17 = arith.constant 0 : index
    %c0_18 = arith.constant 0 : index
    %35 = vector.load %arg6[%c0_17, %c0_18] : memref<4x8xf32, #tpu.memory_space<vmem>>, vector<4x8xf32>
    tpu.vector_store %arg6[%c0_17, %c0_18], %34 {strides = array<i32>} : memref<4x8xf32, #tpu.memory_space<vmem>>, vector<4x8xf32>,
    return
  }
  func.func @transform_0(%arg0: i32) -> (i32, i32) {
    %c0_i32 = arith.constant 0 : i32
    %c0_i32_0 = arith.constant 0 : i32
    return %c0_i32, %arg0 : i32, i32
  }
  func.func @transform_1(%arg0: i32) -> (i32, i32) {
    %c0_i32 = arith.constant 0 : i32
    %c0_i32_0 = arith.constant 0 : i32
    %c0_i32_1 = arith.constant 0 : i32
    return %c0_i32, %c0_i32_0 : i32, i32
  }
  func.func @transform_2(%arg0: i32) -> (i32, i32) {
    %c0_i32 = arith.constant 0 : i32
    %c0_i32_0 = arith.constant 0 : i32
    %c0_i32_1 = arith.constant 0 : i32
    return %c0_i32, %c0_i32_0 : i32, i32
  }
  func.func @transform_3(%arg0: i32) -> (i32, i32) {
    %c0_i32 = arith.constant 0 : i32
    %c0_i32_0 = arith.constant 0 : i32
    %c0_i32_1 = arith.constant 0 : i32
    return %c0_i32, %c0_i32_0 : i32, i32
  }
  func.func @transform_4(%arg0: i32) -> (i32, i32) {
    %c0_i32 = arith.constant 0 : i32
    %c0_i32_0 = arith.constant 0 : i32
    %c0_i32_1 = arith.constant 0 : i32
    return %c0_i32, %c0_i32_0 : i32, i32
  }
  func.func @transform_5(%arg0: i32) -> (i32, i32) {
    %c0_i32 = arith.constant 0 : i32
    %c0_i32_0 = arith.constant 0 : i32
    return %c0_i32, %arg0 : i32, i32
  }
}

</mosaic_0001>

<bundles_post_ra>
// kernel: vanilla_nn_forward.1
= control target key start
LH: loop header
LB: loop body
LE: loop exit
PB: predicated region body
PF: predicated region fallthrough
CT: control target
= control target key end

     0   :  { %vm51_vm0 = vcmask 130048   ;;  %v364_v4 = vmov 0   ;;  %s453_s0 = inlined_call_operand.vmem [shape: f32[16,8], index: 0, kind: input, shape index: {}]   ;;  %s454_s1 = inlined_call_operand.vmem [shape: f32[32,16], index: 1, kind: input, shape index: {}]   ;;  %s455_s2 = inlined_call_operand.vmem [shape: f32[32,1], index: 2, kind: input, shape index: {}]   ;;  %s456_s3 = inlined_call_operand.vmem [shape: f32[4,32], index: 3, kind: input, shape index: {}]   ;;  %s457_s4 = inlined_call_operand.vmem [shape: f32[4,1], index: 4, kind: input, shape index: {}]   ;;  %s458_s5 = inlined_call_operand.hbm [shape: f32[4,8], index: 5, kind: output, shape index: {}]  }
   0x1   :  { %v21_v0 = vld [vmem:[%s453_s0] sm:$0xff]  ;;  %v22_v1 = vld [vmem:[%s453_s0 + $0x8] sm:$0xff]  ;;  %332 = vset.pattern.permute.xlu0 %v364_v4  ;;  %333 = vset.pattern.permute.xlu1 %v364_v4  ;;  %v29_v6 = vld [vmem:[%s455_s2 + $0x10] sm:$0xff] }
   0x2   :  { %v23_v2 = vld [vmem:[%s454_s1] sm:$0xff]  ;;  %v317_v3 = vpack.c.bf16 %v22_v1, %v21_v0 }
   0x3   :  { %300 = vmatprep.mubr.msk.f32.mxu0 %vm51_vm0, %v23_v2  ;;  %v27_v5 = vld [vmem:[%s455_s2] sm:$0xff] }
   0x4   :  { %318 = vmatprep.subr.bf16.mxu0 %v317_v3  ;;  %33 = vperm.xlu0 %332, %v27_v5  }
   0x5   :  { %10 = vsyncpa [#allocation3], 0  ;;  %320 = vmatpush3.bf16.msra.mxu0 %v317_v3  ;;  %v24_v7 = vld [vmem:[%s454_s1 + $0x8] sm:$0xff]  ;;  %43 = vperm.xlu1 %333, %v29_v6   ;;  %v25_v9 = vld [vmem:[%s454_s1 + $0x10] sm:$0xff]  ;;  %v365_v13 = vmov 0.0|0.0   ;;  %vm366_vm1 = vmmov 0  }
   0x6   :  { %v28_v8 = vld [vmem:[%s455_s2 + $0x8] sm:$0xff]  ;;  %v30_v10 = vld [vmem:[%s455_s2 + $0x18] sm:$0xff]  ;;  %v162_v12 = vld [vmem:[%s457_s4] sm:$0xf]  ;;  %321 = vmatprep.subr.bf16.mxu1 %v365_v13  ;;  %v367_v14 = vmov 0.0   ;;  %vm168_vm6 = vcmask 261120  }
   0x7   :  { %v26_v11 = vld [vmem:[%s454_s1 + $0x18] sm:$0xff]  ;;  %314 = vmatprep.mubr.msk.f32.mxu1 %vm366_vm1, %v367_v14  ;;  %v161_v37 = vld [vmem:[%s456_s3] sm:$0xf]  ;;  %vm251_vm8 = vcmask 60416   ;;  %s368_s3 = smov [#allocation2]  }
   0x8   :  { %301 = vmatmul.mubr.msk.f32.vlgmr.msra.gmra.mrb[0].mxu0 %vm51_vm0, %v24_v7  ;;  %38 = vperm.xlu0 %332, %v28_v8   ;;  %s271_s4 = sshll.u32 %s368_s3, 4  ;;  %s272_s4 = int_to_ptr.vmem [resolvable:$true] %s271_s4 }
   0x9   :  { %303 = vmatprep.mubr.msk.f32.mxu0 %vm51_vm0, %v25_v9  ;;  %48 = vperm.xlu1 %333, %v30_v10   ;;  %s340_s14 = scalar_lea.vmem %s272_s4, 64  ;;  %p345_p1 = scmp.lt.s32.totalorder %s272_s4, %s272_s4 }
   0xa   :  { %p341_p0 = scmp.ne.s32.totalorder %s272_s4, %s340_s14  ;;  %p346_p2 = scmp.lt.s32.totalorder %s340_s14, %s340_s14 }
   0xc   :  { %304 = vmatmul.mubr.msk.f32.gmra.mrb[2].mxu0 %vm51_vm0, %v26_v11  ;;  %165 = vperm.xlu0 %332, %v162_v12   ;;  %p347_p3 = por %p346_p2, %p345_p1 }
   0xe   :  { %p348_p4 = pnand %p347_p3, %p341_p0 }
  0x83   :  { %v34_v15 = vpop.permute.xlu0 %33 }
  0x84   :  { %v44_v16 = vpop.permute.xlu1 %43 }
  0x87   :  { %v39_v17 = vpop.permute.xlu0 %38 }
  0x88   :  { %v49_v23 = vpop.permute.xlu1 %48 }
  0x8b   :  { %v166_v38 = vpop.permute.xlu0 %165 }
  0xdb   :  { %v302_v18 = vpop.f32.mrb[0].mxu0 }
  0xdc   :  { %v136_v19 = vadd.f32 %v302_v18, %v39_v17  ;;  %v130_v20 = vpop.f32.mrb[1].mxu0 }
  0xdd   :  { %v131_v21 = vadd.f32 %v130_v20, %v34_v15 }
  0xde   :  { %v154_v22 = vmul.f32 0.01, %v136_v19  ;;  %vm150_vm2 = vcmp.ge.f32.partialorder %v136_v19, 0.0 }
  0xdf   :  { %v153_v24 = vmul.f32 0.01, %v131_v21  ;;  %v305_v25 = vpop.f32.mrb[2].mxu0  ;;  %vm149_vm3 = vcmp.ge.f32.partialorder %v131_v21, 0.0 }
  0xe0   :  { %v146_v26 = vadd.f32 %v305_v25, %v49_v23  ;;  %v140_v27 = vpop.f32.mrb[3].mxu0  ;;  %v158_v28 = vsel %vm150_vm2, %v136_v19, %v154_v22 }
  0xe1   :  { %v141_v29 = vadd.f32 %v140_v27, %v44_v16  ;;  %v157_v30 = vsel %vm149_vm3, %v131_v21, %v153_v24 }
  0xe2   :  { %vm152_vm4 = vcmp.ge.f32.partialorder %v146_v26, 0.0  ;;  %v156_v31 = vmul.f32 0.01, %v146_v26  ;;  %v322_v32 = vpack.c.bf16 %v158_v28, %v157_v30 }
  0xe3   :  { %vm151_vm5 = vcmp.ge.f32.partialorder %v141_v29, 0.0  ;;  %v155_v33 = vmul.f32 0.01, %v141_v29 }
  0xe4   :  { %323 = vmatpush3.bf16.msra.mxu1 %v322_v32  ;;  %v160_v34 = vsel %vm152_vm4, %v146_v26, %v156_v31 }
  0xe5   :  { %324 = vmatprep.subr.bf16.mxu1 %v365_v13  ;;  %v159_v35 = vsel %vm151_vm5, %v141_v29, %v155_v33 }
  0xe6   :  { %v325_v36 = vpack.c.bf16 %v160_v34, %v159_v35 }
  0xe8   :  { %326 = vmatpush3.bf16.msra.mxu1 %v325_v36 }
  0xeb   :  { %315 = vmatmul.mubr.msk.f32.vlgmr.msra.gmra.mrb[0].mxu1 %vm168_vm6, %v161_v37 }
 0x1be   :  { %v238_v39 = vpop.f32.mrb[0].mxu1 }
 0x1bf   :  { %v239_v40 = vadd.f32 %v238_v39, %v166_v38  ;;  %v316_v41 = vpop.f32.mrb[1].mxu1 }
 0x1c1   :  { %vm242_vm7 = vcmp.ge.f32.partialorder %v239_v40, 0.0  ;;  %v243_v42 = vmul.f32 0.01, %v239_v40 }
 0x1c3   :  { %v244_v43 = vsel %vm242_vm7, %v239_v40, %v243_v42 }
 0x1c4   :  { %v284_v44 = vmul.f32 -1.442695, %v244_v43 }
 0x1c6   :  { %334 = vpow2.f32 %v284_v44 }
 0x1d0   :  { %v335_v45 = vpop.eup %334 }
 0x1d1   :  { %v248_v46 = vadd.f32 1.0, %v335_v45 }
 0x1d3   :  { %336 = vrcp.f32 %v248_v46 }
 0x1dd   :  { %v337_v47 = vpop.eup %336 }
 0x1de   :  { %v252_v48 = vsel %vm251_vm8, %v337_v47, 0.0 }
 0x1df   :  { %v253_v49 = vrot.slane %v252_v48, 4 }
 0x1e1   :  { %v254_v50 = vadd.f32 %v253_v49, %v252_v48 }
 0x1e3   :  { %v255_v51 = vrot.slane %v254_v50, 2 }
 0x1e5   :  { %v256_v52 = vadd.f32 %v255_v51, %v254_v50 }
 0x1e7   :  { %v257_v53 = vrot.slane %v256_v52, 1 }
 0x1e9   :  { %v258_v54 = vadd.f32 %v257_v53, %v256_v52 }
 0x1eb   :  { %338 = vrcp.f32 %v258_v54 }
 0x1f5   :  { %v339_v55 = vpop.eup %338 }
 0x1f6   :  { %v260_v56 = vmul.f32 %v339_v55, %v258_v54 }
 0x1f8   :  { %v261_v57 = vsub.f32 2.0, %v260_v56 }
 0x1fa   :  { %v262_v58 = vmul.f32 %v339_v55, %v261_v57 }
 0x1fc   :  { %v263_v59 = vmul.f32 %v337_v47, %v262_v58 }
 0x1fe   :  { %264 = vst.msk [vmem:[#allocation2] sm:$0xf] %vm251_vm8, %v263_v59 }
 0x1ff   :  { %351 = shalt.err (!%p348_p4)
}
 0x200   :  { %s352_s17 = scalar_lea.hbm %s458_s5, 64 }
 0x201   :  { %p353_p5 = scmp.ne.s32.totalorder %s458_s5, %s352_s17  ;;  %p356_p6 = scmp.lt.u32.totalorder %s352_s17, %s458_s5 }
 0x203   :  { %p358_p7 = pnand %p356_p6, %p353_p5 }
 0x205   :  { %361 = shalt.err (!%p358_p7)
}
 0x206   :  { %274 = dma.vmem_to_hbm [thread:$0]  %s272_s4, 64, %s458_s5, [#allocation3]  }
 0x207   :  { %362 = dma.done.wait [#allocation3], 64  }
 0x208   :  { %363 = vsyncadd [#allocation3], 4294967232 }
 0x209   :  { %278 = vsyncpa [#allocation3], 1 }

</bundles_post_ra>
